<compile_context>
chip_gen: v7x
topology: tpu7x:2x2x1
jax: 0.10.0
libtpu: 0.0.40
codegen_flags: <defaults>
</compile_context>

<pallas_src>
import jax
import jax.numpy as jnp
from jax.experimental import pallas as pl
from jax.experimental.pallas import tpu as pltpu


def _round_up(x, m):
    return ((x + m - 1) // m) * m


def _default_block_b():
    # v5e: the 128-wide / 197 TF/s MXU is already the bottleneck -> 256.
    # v6e/v7x: 512 halves the grid-step count (~0.35us/step overhead) and
    # feeds the 256-wide MXU longer uninterrupted LHS streams.
    try:
        kind = jax.devices()[0].device_kind.lower()
        if "v5 lite" in kind or "v5e" in kind or "v5litepod" in kind:
            return 256
    except Exception:
        pass
    return 512


def _pick_batch_tile(B, block_b):
    # >= 2 tiles (unless the batch is tiny) so the parallel batch axis can be
    # sharded across both TensorCores on v7x; tile size rounded to a sublane
    # multiple with minimal last-tile padding.
    n_tiles = pl.cdiv(B, block_b)
    if n_tiles < 2 and B > 8:
        n_tiles = 2
    bm = _round_up(pl.cdiv(B, n_tiles), 8)
    b_pad = n_tiles * bm
    return bm, b_pad, n_tiles


def _vmem_budget_bytes(bm, H, l_pad, out_itemsize, weight_bufs):
    bf16, f32 = 2, 4
    weights = (H * 2 * H + 2 * H * H + H * l_pad) * bf16 * weight_bufs
    biases = (2 * H + H + l_pad) * f32 * weight_bufs
    x_tiles = 2 * bm * H * bf16                        # double-buffered input tile
    out_tiles = 2 * bm * l_pad * out_itemsize          # double-buffered output tile
    interm = bm * (2 * H) * (f32 + bf16) + bm * H * (f32 + bf16)   # h1 / h2 temporaries
    total = weights + biases + x_tiles + out_tiles + interm
    total = int(total * 2) + (4 << 20)                 # compiler scratch / spill headroom
    return min(total, 64 << 20)                        # never request past v7x physical VMEM


def _head_kernel(x_ref, w1_ref, b1_ref, w2_ref, b2_ref, w3_ref, b3_ref, o_ref):
    # x_ref: (bm, H) bf16; weights bf16 [in, out]; biases f32 [1, out].
    x = x_ref[...]

    # dense_1 + ReLU   (dropout -> identity in eval mode)
    h1 = jnp.dot(x, w1_ref[...], preferred_element_type=jnp.float32) + b1_ref[...]
    h1 = jnp.maximum(h1, 0.0).astype(jnp.bfloat16)

    # dense_2 + ReLU   (dropout -> identity in eval mode)
    h2 = jnp.dot(h1, w2_ref[...], preferred_element_type=jnp.float32) + b2_ref[...]
    h2 = jnp.maximum(h2, 0.0).astype(jnp.bfloat16)

    # out_proj (output columns lane-padded to a multiple of 128; pad cols are 0)
    out = jnp.dot(h2, w3_ref[...], preferred_element_type=jnp.float32) + b3_ref[...]
    o_ref[...] = out.astype(o_ref.dtype)


def roberta_classification_head(features, params, *, block_b=None):
    """features: [B, S, H]. params: f32 weights [in,out] + 1-D biases. Returns [B, L]."""
    B, S, H = features.shape
    L = params["w3"].shape[1]
    out_dtype = features.dtype
    out_itemsize = jnp.dtype(out_dtype).itemsize

    if block_b is None:
        block_b = _default_block_b()

    bm, b_pad, n_tiles = _pick_batch_tile(B, block_b)
    l_pad = _round_up(max(L, 1), 128)                  # lane-dense output slab

    # ---- wrapper-side glue (single fused XLA op each) ----------------------
    # TODO(synk): for production shapes (H % 128 == 0) the CLS slice / bf16
    # cast could be folded into the kernel by feeding `features` directly with
    # a (bm, 1, H) BlockSpec; kept in the wrapper so small test shapes stay
    # within Mosaic's (8, 128) block constraints.
    x = features[:, 0, :].astype(jnp.bfloat16)
    x = jnp.pad(x, ((0, b_pad - B), (0, 0)))

    w1 = params["w1"].astype(jnp.bfloat16)
    w2 = params["w2"].astype(jnp.bfloat16)
    w3 = jnp.pad(params["w3"], ((0, 0), (0, l_pad - L))).astype(jnp.bfloat16)

    b1 = params["b1"].reshape(1, -1).astype(jnp.float32)
    b2 = params["b2"].reshape(1, -1).astype(jnp.float32)
    b3 = jnp.pad(params["b3"].reshape(1, -1).astype(jnp.float32),
                 ((0, 0), (0, l_pad - L)))

    flops = 2 * b_pad * (H * 2 * H + 2 * H * H + H * l_pad)
    bytes_accessed = (
        x.size * 2 + w1.size * 2 + w2.size * 2 + w3.size * 2
        + (b1.size + b2.size + b3.size) * 4
        + b_pad * l_pad * out_itemsize
    )

    def _run(weight_bufs):
        # weight_bufs == 1 -> single-buffer the grid-invariant weights/biases.
        extra = {"pipeline_mode": pl.Buffered(1)} if weight_bufs == 1 else {}

        def const_spec(shape):
            return pl.BlockSpec(shape, lambda i: (0,) * len(shape), **extra)

        in_specs = [
            pl.BlockSpec((bm, H), lambda i: (i, 0)),   # x: follows batch grid
            const_spec((H, 2 * H)),                    # w1 (VMEM-resident)
            const_spec((1, 2 * H)),                    # b1
            const_spec((2 * H, H)),                    # w2
            const_spec((1, H)),                        # b2
            const_spec((H, l_pad)),                    # w3 (lane padded)
            const_spec((1, l_pad)),                    # b3 (lane padded)
        ]
        out_specs = pl.BlockSpec((bm, l_pad), lambda i: (i, 0))

        return pl.pallas_call(
            _head_kernel,
            out_shape=jax.ShapeDtypeStruct((b_pad, l_pad), out_dtype),
            grid=(n_tiles,),
            in_specs=in_specs,
            out_specs=out_specs,
            compiler_params=pltpu.CompilerParams(
                dimension_semantics=("parallel",),     # megacore sharding on v7x
                vmem_limit_bytes=_vmem_budget_bytes(bm, H, l_pad,
                                                    out_itemsize, weight_bufs),
            ),
            cost_estimate=pl.CostEstimate(
                flops=flops, transcendentals=0, bytes_accessed=bytes_accessed),
        )(x, w1, b1, w2, b2, w3, b3)

    try:
        out_pad = _run(1)
    except Exception:
        # Fallback: default double-buffered specs (older pipeline_mode support).
        out_pad = _run(2)

    # TODO(synk): for the B <= bm serving case (single grid step) the kernel is
    # weight-HBM-bound; the remaining lever is a cross-pallas_call weight
    # prefetch (P10) at the call site, not a change inside this kernel.

    # Drop batch / label padding.
    return out_pad[:B, :L]


def _init_params(key, hidden_size, num_labels, dtype=jnp.float32):
    """Deterministic synthetic init. Weights stored as [in, out]."""
    k1, k2, k3, k4, k5, k6 = jax.random.split(key, 6)
    scale = 0.02
    return {
        "w1": scale * jax.random.normal(k1, (hidden_size, 2 * hidden_size), dtype),
        "b1": scale * jax.random.normal(k2, (2 * hidden_size,), dtype),
        "w2": scale * jax.random.normal(k3, (2 * hidden_size, hidden_size), dtype),
        "b2": scale * jax.random.normal(k4, (hidden_size,), dtype),
        "w3": scale * jax.random.normal(k5, (hidden_size, num_labels), dtype),
        "b3": scale * jax.random.normal(k6, (num_labels,), dtype),
    }


def _reference(features, params):
    """Pure-JAX f32 reference of the same forward pass (eval mode)."""
    x = features[:, 0, :]
    x = jnp.maximum(x @ params["w1"] + params["b1"], 0.0)
    x = jnp.maximum(x @ params["w2"] + params["b2"], 0.0)
    return x @ params["w3"] + params["b3"]


if __name__ == "__main__":
    B, S, H, L = 2, 8, 32, 3   # batch, seq, hidden_size, num_labels

    key = jax.random.PRNGKey(0)
    k_feat, k_params = jax.random.split(key)
    features = jax.random.normal(k_feat, (B, S, H), jnp.float32)
    params = _init_params(k_params, H, L)

    out = jax.block_until_ready(roberta_classification_head(features, params))
    ref = _reference(features, params)

    assert out.shape == (B, L)
    # bf16 weights/activations with f32 accumulation -> loose-ish tolerance vs f32 ref.
    assert jnp.allclose(out, ref, atol=5e-3, rtol=5e-2), "mismatch vs f32 reference"

    print("KERNEL_OK")
</pallas_src>

<mosaic_0001>
module attributes {stable_mosaic.version = 11 : i64} {
  func.func @_head_kernel(%arg0: i32, %arg1: memref<8x32xbf16, #tpu.memory_space<vmem>>, %arg2: memref<32x64xbf16, #tpu.memory_space<vmem>>, %arg3: memref<1x64xf32, #tpu.memory_space<vmem>>, %arg4: memref<64x32xbf16, #tpu.memory_space<vmem>>, %arg5: memref<1x32xf32, #tpu.memory_space<vmem>>, %arg6: memref<32x128xbf16, #tpu.memory_space<vmem>>, %arg7: memref<1x128xf32, #tpu.memory_space<vmem>>, %arg8: memref<8x128xf32, #tpu.memory_space<vmem>>) attributes {dimension_semantics = [#tpu.dimension_semantics<parallel>], iteration_bounds = array<i64: 1>, scalar_prefetch = 0 : i64, scratch_operands = 0 : i64, tpu.core_type = #tpu.core_type<tc>, window_params = [{transform_indices = @transform_0, window_bounds = array<i64: 8, 32>}, {pipeline_mode = #tpu.pipeline_mode<synchronous>, transform_indices = @transform_1, window_bounds = array<i64: 32, 64>}, {pipeline_mode = #tpu.pipeline_mode<synchronous>, transform_indices = @transform_2, window_bounds = array<i64: 1, 64>}, {pipeline_mode = #tpu.pipeline_mode<synchronous>, transform_indices = @transform_3, window_bounds = array<i64: 64, 32>}, {pipeline_mode = #tpu.pipeline_mode<synchronous>, transform_indices = @transform_4, window_bounds = array<i64: 1, 32>}, {pipeline_mode = #tpu.pipeline_mode<synchronous>, transform_indices = @transform_5, window_bounds = array<i64: 32, 128>}, {pipeline_mode = #tpu.pipeline_mode<synchronous>, transform_indices = @transform_6, window_bounds = array<i64: 1, 128>}, {transform_indices = @transform_7, window_bounds = array<i64: 8, 128>}]} {
    %c0 = arith.constant 0 : index
    %c0_0 = arith.constant 0 : index
    %0 = vector.load %arg1[%c0, %c0_0] : memref<8x32xbf16, #tpu.memory_space<vmem>>, vector<8x32xbf16>
    %c0_1 = arith.constant 0 : index
    %c0_2 = arith.constant 0 : index
    %1 = vector.load %arg2[%c0_1, %c0_2] : memref<32x64xbf16, #tpu.memory_space<vmem>>, vector<32x64xbf16>
    %cst = arith.constant dense<0.000000e+00> : vector<8x64xf32>
    %2 = tpu.matmul %0, %1, %cst {dimension_numbers = #tpu.dot_dimension_numbers<[1], [0], [0], [1], [0, 0, 1, 1], [], []>} : vector<8x32xbf16>, vector<32x64xbf16>, vector<8x64xf32> -> vector<8x64xf32>
    %c0_3 = arith.constant 0 : index
    %c0_4 = arith.constant 0 : index
    %3 = vector.load %arg3[%c0_3, %c0_4] : memref<1x64xf32, #tpu.memory_space<vmem>>, vector<1x64xf32>
    %4 = vector.broadcast %3 : vector<1x64xf32> to vector<8x64xf32>
    %5 = arith.addf %2, %4 : vector<8x64xf32>
    %cst_5 = arith.constant 0.000000e+00 : f32
    %6 = vector.broadcast %cst_5 : f32 to vector<8x64xf32>
    %7 = arith.maximumf %5, %6 : vector<8x64xf32>
    %8 = arith.truncf %7 : vector<8x64xf32> to vector<8x64xbf16>
    %c0_6 = arith.constant 0 : index
    %c0_7 = arith.constant 0 : index
    %9 = vector.load %arg4[%c0_6, %c0_7] : memref<64x32xbf16, #tpu.memory_space<vmem>>, vector<64x32xbf16>
    %cst_8 = arith.constant dense<0.000000e+00> : vector<8x32xf32>
    %10 = tpu.matmul %8, %9, %cst_8 {dimension_numbers = #tpu.dot_dimension_numbers<[1], [0], [0], [1], [0, 0, 1, 1], [], []>} : vector<8x64xbf16>, vector<64x32xbf16>, vector<8x32xf32> -> vector<8x32xf32>
    %c0_9 = arith.constant 0 : index
    %c0_10 = arith.constant 0 : index
    %11 = vector.load %arg5[%c0_9, %c0_10] : memref<1x32xf32, #tpu.memory_space<vmem>>, vector<1x32xf32>
    %12 = vector.broadcast %11 : vector<1x32xf32> to vector<8x32xf32>
    %13 = arith.addf %10, %12 : vector<8x32xf32>
    %cst_11 = arith.constant 0.000000e+00 : f32
    %14 = vector.broadcast %cst_11 : f32 to vector<8x32xf32>
    %15 = arith.maximumf %13, %14 : vector<8x32xf32>
    %16 = arith.truncf %15 : vector<8x32xf32> to vector<8x32xbf16>
    %c0_12 = arith.constant 0 : index
    %c0_13 = arith.constant 0 : index
    %17 = vector.load %arg6[%c0_12, %c0_13] : memref<32x128xbf16, #tpu.memory_space<vmem>>, vector<32x128xbf16>
    %cst_14 = arith.constant dense<0.000000e+00> : vector<8x128xf32>
    %18 = tpu.matmul %16, %17, %cst_14 {dimension_numbers = #tpu.dot_dimension_numbers<[1], [0], [0], [1], [0, 0, 1, 1], [], []>} : vector<8x32xbf16>, vector<32x128xbf16>, vector<8x128xf32> -> vector<8x128xf32>
    %c0_15 = arith.constant 0 : index
    %c0_16 = arith.constant 0 : index
    %19 = vector.load %arg7[%c0_15, %c0_16] : memref<1x128xf32, #tpu.memory_space<vmem>>, vector<1x128xf32>
    %20 = vector.broadcast %19 : vector<1x128xf32> to vector<8x128xf32>
    %21 = arith.addf %18, %20 : vector<8x128xf32>
    %c0_17 = arith.constant 0 : index
    %c0_18 = arith.constant 0 : index
    %22 = vector.load %arg8[%c0_17, %c0_18] : memref<8x128xf32, #tpu.memory_space<vmem>>, vector<8x128xf32>
    tpu.vector_store %arg8[%c0_17, %c0_18], %21 {strides = array<i32>} : memref<8x128xf32, #tpu.memory_space<vmem>>, vector<8x128xf32>,
    return
  }
  func.func @transform_0(%arg0: i32) -> (i32, i32) {
    %c0_i32 = arith.constant 0 : i32
    %c0_i32_0 = arith.constant 0 : i32
    return %arg0, %c0_i32 : i32, i32
  }
  func.func @transform_1(%arg0: i32) -> (i32, i32) {
    %c0_i32 = arith.constant 0 : i32
    %c0_i32_0 = arith.constant 0 : i32
    %c0_i32_1 = arith.constant 0 : i32
    return %c0_i32, %c0_i32_0 : i32, i32
  }
  func.func @transform_2(%arg0: i32) -> (i32, i32) {
    %c0_i32 = arith.constant 0 : i32
    %c0_i32_0 = arith.constant 0 : i32
    %c0_i32_1 = arith.constant 0 : i32
    return %c0_i32, %c0_i32_0 : i32, i32
  }
  func.func @transform_3(%arg0: i32) -> (i32, i32) {
    %c0_i32 = arith.constant 0 : i32
    %c0_i32_0 = arith.constant 0 : i32
    %c0_i32_1 = arith.constant 0 : i32
    return %c0_i32, %c0_i32_0 : i32, i32
  }
  func.func @transform_4(%arg0: i32) -> (i32, i32) {
    %c0_i32 = arith.constant 0 : i32
    %c0_i32_0 = arith.constant 0 : i32
    %c0_i32_1 = arith.constant 0 : i32
    return %c0_i32, %c0_i32_0 : i32, i32
  }
  func.func @transform_5(%arg0: i32) -> (i32, i32) {
    %c0_i32 = arith.constant 0 : i32
    %c0_i32_0 = arith.constant 0 : i32
    %c0_i32_1 = arith.constant 0 : i32
    return %c0_i32, %c0_i32_0 : i32, i32
  }
  func.func @transform_6(%arg0: i32) -> (i32, i32) {
    %c0_i32 = arith.constant 0 : i32
    %c0_i32_0 = arith.constant 0 : i32
    %c0_i32_1 = arith.constant 0 : i32
    return %c0_i32, %c0_i32_0 : i32, i32
  }
  func.func @transform_7(%arg0: i32) -> (i32, i32) {
    %c0_i32 = arith.constant 0 : i32
    %c0_i32_0 = arith.constant 0 : i32
    return %arg0, %c0_i32 : i32, i32
  }
}

module attributes {stable_mosaic.version = 11 : i64} {
  func.func @_head_kernel(%arg0: i32, %arg1: memref<8x32xbf16, #tpu.memory_space<vmem>>, %arg2: memref<32x64xbf16, #tpu.memory_space<vmem>>, %arg3: memref<1x64xf32, #tpu.memory_space<vmem>>, %arg4: memref<64x32xbf16, #tpu.memory_space<vmem>>, %arg5: memref<1x32xf32, #tpu.memory_space<vmem>>, %arg6: memref<32x128xbf16, #tpu.memory_space<vmem>>, %arg7: memref<1x128xf32, #tpu.memory_space<vmem>>, %arg8: memref<8x128xf32, #tpu.memory_space<vmem>>) attributes {dimension_semantics = [#tpu.dimension_semantics<parallel>], iteration_bounds = array<i64: 1>, scalar_prefetch = 0 : i64, scratch_operands = 0 : i64, tpu.core_type = #tpu.core_type<tc>, window_params = [{transform_indices = @transform_0, window_bounds = array<i64: 8, 32>}, {pipeline_mode = #tpu.pipeline_mode<synchronous>, transform_indices = @transform_1, window_bounds = array<i64: 32, 64>}, {pipeline_mode = #tpu.pipeline_mode<synchronous>, transform_indices = @transform_2, window_bounds = array<i64: 1, 64>}, {pipeline_mode = #tpu.pipeline_mode<synchronous>, transform_indices = @transform_3, window_bounds = array<i64: 64, 32>}, {pipeline_mode = #tpu.pipeline_mode<synchronous>, transform_indices = @transform_4, window_bounds = array<i64: 1, 32>}, {pipeline_mode = #tpu.pipeline_mode<synchronous>, transform_indices = @transform_5, window_bounds = array<i64: 32, 128>}, {pipeline_mode = #tpu.pipeline_mode<synchronous>, transform_indices = @transform_6, window_bounds = array<i64: 1, 128>}, {transform_indices = @transform_7, window_bounds = array<i64: 8, 128>}]} {
    %c0 = arith.constant 0 : index
    %c0_0 = arith.constant 0 : index
    %0 = vector.load %arg1[%c0, %c0_0] : memref<8x32xbf16, #tpu.memory_space<vmem>>, vector<8x32xbf16>
    %c0_1 = arith.constant 0 : index
    %c0_2 = arith.constant 0 : index
    %1 = vector.load %arg2[%c0_1, %c0_2] : memref<32x64xbf16, #tpu.memory_space<vmem>>, vector<32x64xbf16>
    %cst = arith.constant dense<0.000000e+00> : vector<8x64xf32>
    %2 = tpu.matmul %0, %1, %cst {dimension_numbers = #tpu.dot_dimension_numbers<[1], [0], [0], [1], [0, 0, 1, 1], [], []>} : vector<8x32xbf16>, vector<32x64xbf16>, vector<8x64xf32> -> vector<8x64xf32>
    %c0_3 = arith.constant 0 : index
    %c0_4 = arith.constant 0 : index
    %3 = vector.load %arg3[%c0_3, %c0_4] : memref<1x64xf32, #tpu.memory_space<vmem>>, vector<1x64xf32>
    %4 = vector.broadcast %3 : vector<1x64xf32> to vector<8x64xf32>
    %5 = arith.addf %2, %4 : vector<8x64xf32>
    %cst_5 = arith.constant 0.000000e+00 : f32
    %6 = vector.broadcast %cst_5 : f32 to vector<8x64xf32>
    %7 = arith.maximumf %5, %6 : vector<8x64xf32>
    %8 = arith.truncf %7 : vector<8x64xf32> to vector<8x64xbf16>
    %c0_6 = arith.constant 0 : index
    %c0_7 = arith.constant 0 : index
    %9 = vector.load %arg4[%c0_6, %c0_7] : memref<64x32xbf16, #tpu.memory_space<vmem>>, vector<64x32xbf16>
    %cst_8 = arith.constant dense<0.000000e+00> : vector<8x32xf32>
    %10 = tpu.matmul %8, %9, %cst_8 {dimension_numbers = #tpu.dot_dimension_numbers<[1], [0], [0], [1], [0, 0, 1, 1], [], []>} : vector<8x64xbf16>, vector<64x32xbf16>, vector<8x32xf32> -> vector<8x32xf32>
    %c0_9 = arith.constant 0 : index
    %c0_10 = arith.constant 0 : index
    %11 = vector.load %arg5[%c0_9, %c0_10] : memref<1x32xf32, #tpu.memory_space<vmem>>, vector<1x32xf32>
    %12 = vector.broadcast %11 : vector<1x32xf32> to vector<8x32xf32>
    %13 = arith.addf %10, %12 : vector<8x32xf32>
    %cst_11 = arith.constant 0.000000e+00 : f32
    %14 = vector.broadcast %cst_11 : f32 to vector<8x32xf32>
    %15 = arith.maximumf %13, %14 : vector<8x32xf32>
    %16 = arith.truncf %15 : vector<8x32xf32> to vector<8x32xbf16>
    %c0_12 = arith.constant 0 : index
    %c0_13 = arith.constant 0 : index
    %17 = vector.load %arg6[%c0_12, %c0_13] : memref<32x128xbf16, #tpu.memory_space<vmem>>, vector<32x128xbf16>
    %cst_14 = arith.constant dense<0.000000e+00> : vector<8x128xf32>
    %18 = tpu.matmul %16, %17, %cst_14 {dimension_numbers = #tpu.dot_dimension_numbers<[1], [0], [0], [1], [0, 0, 1, 1], [], []>} : vector<8x32xbf16>, vector<32x128xbf16>, vector<8x128xf32> -> vector<8x128xf32>
    %c0_15 = arith.constant 0 : index
    %c0_16 = arith.constant 0 : index
    %19 = vector.load %arg7[%c0_15, %c0_16] : memref<1x128xf32, #tpu.memory_space<vmem>>, vector<1x128xf32>
    %20 = vector.broadcast %19 : vector<1x128xf32> to vector<8x128xf32>
    %21 = arith.addf %18, %20 : vector<8x128xf32>
    %c0_17 = arith.constant 0 : index
    %c0_18 = arith.constant 0 : index
    %22 = vector.load %arg8[%c0_17, %c0_18] : memref<8x128xf32, #tpu.memory_space<vmem>>, vector<8x128xf32>
    tpu.vector_store %arg8[%c0_17, %c0_18], %21 {strides = array<i32>} : memref<8x128xf32, #tpu.memory_space<vmem>>, vector<8x128xf32>,
    return
  }
  func.func @transform_0(%arg0: i32) -> (i32, i32) {
    %c0_i32 = arith.constant 0 : i32
    %c0_i32_0 = arith.constant 0 : i32
    return %arg0, %c0_i32 : i32, i32
  }
  func.func @transform_1(%arg0: i32) -> (i32, i32) {
    %c0_i32 = arith.constant 0 : i32
    %c0_i32_0 = arith.constant 0 : i32
    %c0_i32_1 = arith.constant 0 : i32
    return %c0_i32, %c0_i32_0 : i32, i32
  }
  func.func @transform_2(%arg0: i32) -> (i32, i32) {
    %c0_i32 = arith.constant 0 : i32
    %c0_i32_0 = arith.constant 0 : i32
    %c0_i32_1 = arith.constant 0 : i32
    return %c0_i32, %c0_i32_0 : i32, i32
  }
  func.func @transform_3(%arg0: i32) -> (i32, i32) {
    %c0_i32 = arith.constant 0 : i32
    %c0_i32_0 = arith.constant 0 : i32
    %c0_i32_1 = arith.constant 0 : i32
    return %c0_i32, %c0_i32_0 : i32, i32
  }
  func.func @transform_4(%arg0: i32) -> (i32, i32) {
    %c0_i32 = arith.constant 0 : i32
    %c0_i32_0 = arith.constant 0 : i32
    %c0_i32_1 = arith.constant 0 : i32
    return %c0_i32, %c0_i32_0 : i32, i32
  }
  func.func @transform_5(%arg0: i32) -> (i32, i32) {
    %c0_i32 = arith.constant 0 : i32
    %c0_i32_0 = arith.constant 0 : i32
    %c0_i32_1 = arith.constant 0 : i32
    return %c0_i32, %c0_i32_0 : i32, i32
  }
  func.func @transform_6(%arg0: i32) -> (i32, i32) {
    %c0_i32 = arith.constant 0 : i32
    %c0_i32_0 = arith.constant 0 : i32
    %c0_i32_1 = arith.constant 0 : i32
    return %c0_i32, %c0_i32_0 : i32, i32
  }
  func.func @transform_7(%arg0: i32) -> (i32, i32) {
    %c0_i32 = arith.constant 0 : i32
    %c0_i32_0 = arith.constant 0 : i32
    return %arg0, %c0_i32 : i32, i32
  }
}

</mosaic_0001>

<bundles_post_ra>
// kernel: tpu_custom_call.1
= control target key start
LH: loop header
LB: loop body
LE: loop exit
PB: predicated region body
PF: predicated region fallthrough
CT: control target
= control target key end

     0   :  { %v352_v1 = vmov 0.0   ;;  %vm353_vm0 = vmmov 0   ;;  %vm52_vm1 = vcmask 261120   ;;  %s448_s0 = inlined_call_operand.vmem [shape: bf16[8,32], index: 0, kind: input, shape index: {}]   ;;  %s449_s1 = inlined_call_operand.vmem [shape: bf16[32,64], index: 1, kind: input, shape index: {}]   ;;  %s450_s2 = inlined_call_operand.vmem [shape: f32[1,64], index: 2, kind: input, shape index: {}]   ;;  %s451_s3 = inlined_call_operand.vmem [shape: bf16[64,32], index: 3, kind: input, shape index: {}]   ;;  %s452_s4 = inlined_call_operand.vmem [shape: f32[1,32], index: 4, kind: input, shape index: {}]   ;;  %s453_s5 = inlined_call_operand.vmem [shape: bf16[32,128], index: 5, kind: input, shape index: {}]   ;;  %s454_s6 = inlined_call_operand.vmem [shape: f32[1,128], index: 6, kind: input, shape index: {}]   ;;  %s455_s7 = inlined_call_operand.hbm [shape: f32[8,128], index: 7, kind: output, shape index: {}]  }
   0x1   :  { %v320_v0 = vld [vmem:[%s449_s1] sm:$0xff]   ;;  %289 = vmatprep.subr.bf16.mxu0 %v352_v1  ;;  %297 = vmatprep.subr.bf16.mxu1 %v352_v1  ;;  %v321_v2 = vld [vmem:[%s449_s1 + $0x8] sm:$0xff]  }
   0x2   :  { %290 = vmatpush3.bf16.msra.mxu0 %v320_v0  ;;  %293 = vmatprep.mubr.msk.bf16.mxu0 %vm353_vm0, %v352_v1  ;;  %v322_v3 = vld [vmem:[%s451_s3] sm:$0xff]   ;;  %v323_v5 = vld [vmem:[%s451_s3 + $0x8] sm:$0xff]  }
   0x3   :  { %291 = vmatprep.subr.bf16.mxu0 %v352_v1  ;;  %305 = vmatprep.mubr.msk.bf16.mxu1 %vm353_vm0, %v352_v1  ;;  %v28_v4 = vld [vmem:[%s448_s0] sm:$0xf] }
   0x4   :  { %298 = vmatpush3.bf16.msra.mxu1 %v322_v3 }
   0x5   :  { %299 = vmatprep.subr.bf16.mxu1 %v352_v1 }
   0x6   :  { %292 = vmatpush3.bf16.msra.mxu0 %v321_v2 }
   0x7   :  { %309 = vmatprep.subr.bf16.mxu0 %v352_v1 }
   0x8   :  { %12 = vsyncpa [#allocation3], 0  ;;  %300 = vmatpush3.bf16.msra.mxu1 %v323_v5  ;;  %v324_v6 = vld [vmem:[%s451_s3 + $0x10] sm:$0xff]   ;;  %v325_v7 = vld [vmem:[%s451_s3 + $0x18] sm:$0xff]   ;;  %vm137_vm2 = vcmask 523264   ;;  %s354_s21 = smov [#allocation2]  }
   0x9   :  { %294 = vmatmul.mubr.msk.bf16.vlgmr.msra.gmra.mrb[0].mxu0 %vm52_vm1, %v28_v4  ;;  %301 = vmatprep.subr.bf16.mxu1 %v352_v1  ;;  %v326_v8 = vld [vmem:[%s453_s5] sm:$0xff]   ;;  %v327_v17 = vld [vmem:[%s453_s5 + $0x8] sm:$0xff]   ;;  %s256_s5 = sshll.u32 %s354_s21, 4  ;;  %s257_s5 = int_to_ptr.vmem [resolvable:$true] %s256_s5 }
   0xa   :  { %313 = vmatprep.mubr.msk.bf16.mxu0 %vm353_vm0, %v352_v1  ;;  %310 = vmatpush3.bf16.msra.mxu0 %v326_v8  ;;  %v264_v9 = vld [vmem:[%s450_s2] ss:$0 sm:$0xff]  ;;  %p333_p1 = scmp.lt.s32.totalorder %s257_s5, %s257_s5 }
   0xb   :  { %311 = vmatprep.subr.bf16.mxu0 %v352_v1  ;;  %v268_v18 = vld [vmem:[%s452_s4] ss:$0 sm:$0xff]  ;;  %s328_s4 = scalar_lea.vmem %s257_s5, 128 }
   0xc   :  { %302 = vmatpush3.bf16.msra.mxu1 %v324_v6  ;;  %v274_v26 = vld [vmem:[%s454_s6] ss:$0 sm:$0xff]  ;;  %p329_p0 = scmp.ne.s32.totalorder %s257_s5, %s328_s4  ;;  %p334_p2 = scmp.lt.s32.totalorder %s328_s4, %s328_s4 }
   0xd   :  { %303 = vmatprep.subr.bf16.mxu1 %v352_v1 }
   0xe   :  { %312 = vmatpush3.bf16.msra.mxu0 %v327_v17  ;;  %p335_p3 = por %p334_p2, %p333_p1 }
  0x10   :  { %304 = vmatpush3.bf16.msra.mxu1 %v325_v7  ;;  %p336_p4 = pnand %p335_p3, %p329_p0 }
  0xdc   :  { %v90_v10 = vpop.f32.mrb[0].mxu0 }
  0xdd   :  { %v91_v11 = vadd.f32 %v264_v9, %v90_v10  ;;  %v295_v12 = vpop.f32.mrb[1].mxu0 }
  0xde   :  { %v93_v13 = vpop.f32.mrb[2].mxu0 }
  0xdf   :  { %v96_v14 = vmax.f32 %v91_v11, 0.0  ;;  %v296_v15 = vpop.f32.mrb[3].mxu0 }
  0xe1   :  { %v97_v16 = vpack.c.bf16 %v96_v14, %v96_v14 }
  0xe3   :  { %306 = vmatmul.mubr.msk.bf16.vlgmr.msra.gmra.mrb[0].mxu1 %vm137_vm2, %v97_v16 }
 0x1b6   :  { %v175_v19 = vpop.f32.mrb[0].mxu1 }
 0x1b7   :  { %v176_v20 = vadd.f32 %v268_v18, %v175_v19  ;;  %v307_v21 = vpop.f32.mrb[1].mxu1 }
 0x1b8   :  { %v178_v22 = vpop.f32.mrb[2].mxu1 }
 0x1b9   :  { %v181_v23 = vmax.f32 %v176_v20, 0.0  ;;  %v308_v24 = vpop.f32.mrb[3].mxu1 }
 0x1bb   :  { %v182_v25 = vpack.c.bf16 %v181_v23, %v181_v23 }
 0x1bd   :  { %314 = vmatmul.mubr.msk.bf16.vlgmr.msra.gmra.mrb[4].mxu0 %vm52_vm1, %v182_v25 }
 0x290   :  { %v243_v27 = vpop.f32.mrb[4].mxu0 }
 0x291   :  { %v244_v28 = vadd.f32 %v274_v26, %v243_v27  ;;  %v315_v29 = vpop.f32.mrb[5].mxu0 }
 0x292   :  { %v246_v30 = vpop.f32.mrb[6].mxu0 }
 0x293   :  { %249 = vst [vmem:[#allocation2] sm:$0xff] %v244_v28  ;;  %v316_v31 = vpop.f32.mrb[7].mxu0 }
 0x294   :  { %339 = shalt.err (!%p336_p4)
}
 0x295   :  { %s340_s6 = scalar_lea.hbm %s455_s7, 128 }
 0x296   :  { %p341_p5 = scmp.ne.s32.totalorder %s455_s7, %s340_s6  ;;  %p344_p6 = scmp.lt.u32.totalorder %s340_s6, %s455_s7 }
 0x298   :  { %p346_p7 = pnand %p344_p6, %p341_p5 }
 0x29a   :  { %349 = shalt.err (!%p346_p7)
}
 0x29b   :  { %259 = dma.vmem_to_hbm [thread:$0]  %s257_s5, 128, %s455_s7, [#allocation3]  }
 0x29c   :  { %350 = dma.done.wait [#allocation3], 128  }
 0x29d   :  { %351 = vsyncadd [#allocation3], 4294967168 }
 0x29e   :  { %263 = vsyncpa [#allocation3], 1 }

// kernel: tpu_custom_call.1
= control target key start
LH: loop header
LB: loop body
LE: loop exit
PB: predicated region body
PF: predicated region fallthrough
CT: control target
= control target key end

     0   :  { %v352_v1 = vmov 0.0   ;;  %vm353_vm0 = vmmov 0   ;;  %vm52_vm1 = vcmask 261120   ;;  %s448_s0 = inlined_call_operand.vmem [shape: bf16[8,32], index: 0, kind: input, shape index: {}]   ;;  %s449_s1 = inlined_call_operand.vmem [shape: bf16[32,64], index: 1, kind: input, shape index: {}]   ;;  %s450_s2 = inlined_call_operand.vmem [shape: f32[1,64], index: 2, kind: input, shape index: {}]   ;;  %s451_s3 = inlined_call_operand.vmem [shape: bf16[64,32], index: 3, kind: input, shape index: {}]   ;;  %s452_s4 = inlined_call_operand.vmem [shape: f32[1,32], index: 4, kind: input, shape index: {}]   ;;  %s453_s5 = inlined_call_operand.vmem [shape: bf16[32,128], index: 5, kind: input, shape index: {}]   ;;  %s454_s6 = inlined_call_operand.vmem [shape: f32[1,128], index: 6, kind: input, shape index: {}]   ;;  %s455_s7 = inlined_call_operand.hbm [shape: f32[8,128], index: 7, kind: output, shape index: {}]  }
   0x1   :  { %v320_v0 = vld [vmem:[%s449_s1] sm:$0xff]   ;;  %289 = vmatprep.subr.bf16.mxu0 %v352_v1  ;;  %297 = vmatprep.subr.bf16.mxu1 %v352_v1  ;;  %v321_v2 = vld [vmem:[%s449_s1 + $0x8] sm:$0xff]  }
   0x2   :  { %290 = vmatpush3.bf16.msra.mxu0 %v320_v0  ;;  %293 = vmatprep.mubr.msk.bf16.mxu0 %vm353_vm0, %v352_v1  ;;  %v322_v3 = vld [vmem:[%s451_s3] sm:$0xff]   ;;  %v323_v5 = vld [vmem:[%s451_s3 + $0x8] sm:$0xff]  }
   0x3   :  { %291 = vmatprep.subr.bf16.mxu0 %v352_v1  ;;  %305 = vmatprep.mubr.msk.bf16.mxu1 %vm353_vm0, %v352_v1  ;;  %v28_v4 = vld [vmem:[%s448_s0] sm:$0xf] }
   0x4   :  { %298 = vmatpush3.bf16.msra.mxu1 %v322_v3 }
   0x5   :  { %299 = vmatprep.subr.bf16.mxu1 %v352_v1 }
   0x6   :  { %292 = vmatpush3.bf16.msra.mxu0 %v321_v2 }
   0x7   :  { %309 = vmatprep.subr.bf16.mxu0 %v352_v1 }
   0x8   :  { %12 = vsyncpa [#allocation3], 0  ;;  %300 = vmatpush3.bf16.msra.mxu1 %v323_v5  ;;  %v324_v6 = vld [vmem:[%s451_s3 + $0x10] sm:$0xff]   ;;  %v325_v7 = vld [vmem:[%s451_s3 + $0x18] sm:$0xff]   ;;  %vm137_vm2 = vcmask 523264   ;;  %s354_s21 = smov [#allocation2]  }
   0x9   :  { %294 = vmatmul.mubr.msk.bf16.vlgmr.msra.gmra.mrb[0].mxu0 %vm52_vm1, %v28_v4  ;;  %301 = vmatprep.subr.bf16.mxu1 %v352_v1  ;;  %v326_v8 = vld [vmem:[%s453_s5] sm:$0xff]   ;;  %v327_v17 = vld [vmem:[%s453_s5 + $0x8] sm:$0xff]   ;;  %s256_s5 = sshll.u32 %s354_s21, 4  ;;  %s257_s5 = int_to_ptr.vmem [resolvable:$true] %s256_s5 }
   0xa   :  { %313 = vmatprep.mubr.msk.bf16.mxu0 %vm353_vm0, %v352_v1  ;;  %310 = vmatpush3.bf16.msra.mxu0 %v326_v8  ;;  %v264_v9 = vld [vmem:[%s450_s2] ss:$0 sm:$0xff]  ;;  %p333_p1 = scmp.lt.s32.totalorder %s257_s5, %s257_s5 }
   0xb   :  { %311 = vmatprep.subr.bf16.mxu0 %v352_v1  ;;  %v268_v18 = vld [vmem:[%s452_s4] ss:$0 sm:$0xff]  ;;  %s328_s4 = scalar_lea.vmem %s257_s5, 128 }
   0xc   :  { %302 = vmatpush3.bf16.msra.mxu1 %v324_v6  ;;  %v274_v26 = vld [vmem:[%s454_s6] ss:$0 sm:$0xff]  ;;  %p329_p0 = scmp.ne.s32.totalorder %s257_s5, %s328_s4  ;;  %p334_p2 = scmp.lt.s32.totalorder %s328_s4, %s328_s4 }
   0xd   :  { %303 = vmatprep.subr.bf16.mxu1 %v352_v1 }
   0xe   :  { %312 = vmatpush3.bf16.msra.mxu0 %v327_v17  ;;  %p335_p3 = por %p334_p2, %p333_p1 }
  0x10   :  { %304 = vmatpush3.bf16.msra.mxu1 %v325_v7  ;;  %p336_p4 = pnand %p335_p3, %p329_p0 }
  0xdc   :  { %v90_v10 = vpop.f32.mrb[0].mxu0 }
  0xdd   :  { %v91_v11 = vadd.f32 %v264_v9, %v90_v10  ;;  %v295_v12 = vpop.f32.mrb[1].mxu0 }
  0xde   :  { %v93_v13 = vpop.f32.mrb[2].mxu0 }
  0xdf   :  { %v96_v14 = vmax.f32 %v91_v11, 0.0  ;;  %v296_v15 = vpop.f32.mrb[3].mxu0 }
  0xe1   :  { %v97_v16 = vpack.c.bf16 %v96_v14, %v96_v14 }
  0xe3   :  { %306 = vmatmul.mubr.msk.bf16.vlgmr.msra.gmra.mrb[0].mxu1 %vm137_vm2, %v97_v16 }
 0x1b6   :  { %v175_v19 = vpop.f32.mrb[0].mxu1 }
 0x1b7   :  { %v176_v20 = vadd.f32 %v268_v18, %v175_v19  ;;  %v307_v21 = vpop.f32.mrb[1].mxu1 }
 0x1b8   :  { %v178_v22 = vpop.f32.mrb[2].mxu1 }
 0x1b9   :  { %v181_v23 = vmax.f32 %v176_v20, 0.0  ;;  %v308_v24 = vpop.f32.mrb[3].mxu1 }
 0x1bb   :  { %v182_v25 = vpack.c.bf16 %v181_v23, %v181_v23 }
 0x1bd   :  { %314 = vmatmul.mubr.msk.bf16.vlgmr.msra.gmra.mrb[4].mxu0 %vm52_vm1, %v182_v25 }
 0x290   :  { %v243_v27 = vpop.f32.mrb[4].mxu0 }
 0x291   :  { %v244_v28 = vadd.f32 %v274_v26, %v243_v27  ;;  %v315_v29 = vpop.f32.mrb[5].mxu0 }
 0x292   :  { %v246_v30 = vpop.f32.mrb[6].mxu0 }
 0x293   :  { %249 = vst [vmem:[#allocation2] sm:$0xff] %v244_v28  ;;  %v316_v31 = vpop.f32.mrb[7].mxu0 }
 0x294   :  { %339 = shalt.err (!%p336_p4)
}
 0x295   :  { %s340_s6 = scalar_lea.hbm %s455_s7, 128 }
 0x296   :  { %p341_p5 = scmp.ne.s32.totalorder %s455_s7, %s340_s6  ;;  %p344_p6 = scmp.lt.u32.totalorder %s340_s6, %s455_s7 }
 0x298   :  { %p346_p7 = pnand %p344_p6, %p341_p5 }
 0x29a   :  { %349 = shalt.err (!%p346_p7)
}
 0x29b   :  { %259 = dma.vmem_to_hbm [thread:$0]  %s257_s5, 128, %s455_s7, [#allocation3]  }
 0x29c   :  { %350 = dma.done.wait [#allocation3], 128  }
 0x29d   :  { %351 = vsyncadd [#allocation3], 4294967168 }
 0x29e   :  { %263 = vsyncpa [#allocation3], 1 }

</bundles_post_ra>
